<compile_context>
chip_gen: v5e
topology: v5e:2x2
jax: 0.10.0
libtpu: 0.0.40
codegen_flags: <defaults>
</compile_context>

<pallas_src>
import jax
import jax.numpy as jnp
from jax.experimental import pallas as pl
from jax.experimental.pallas import tpu as pltpu


def mlp_d_kernel(x_ref, p_ref, o_ref):
    # p_ref row layout:
    #   [0, in_dim)               : w1  (in_dim, nz)
    #   [in_dim, in_dim+nz)       : w2  (nz, nz)
    #   in_dim+nz     + 0         : b1  (1, nz)
    #   in_dim+nz     + 1         : b2  (1, nz)
    #   in_dim+nz     + 2         : w3 as a row (1, nz)
    #   in_dim+nz     + 3         : [b3, 0, ..., 0] (1, nz)
    #   remaining rows            : zero padding to a multiple of 8 sublanes
    in_dim = x_ref.shape[1]
    nz = p_ref.shape[1]
    aux0 = in_dim + nz

    # bf16 for the MXU (single-pass matmul on all generations); f32 accumulate.
    w1 = p_ref[0:in_dim, :].astype(jnp.bfloat16)             # (in_dim, nz)
    w2 = p_ref[in_dim:aux0, :].astype(jnp.bfloat16)          # (nz, nz)
    b1 = p_ref[aux0 + 0:aux0 + 1, :]                         # (1, nz) f32
    b2 = p_ref[aux0 + 1:aux0 + 2, :]                         # (1, nz) f32
    w3_row = p_ref[aux0 + 2:aux0 + 3, :]                     # (1, nz) f32
    b3_row = p_ref[aux0 + 3:aux0 + 4, :]                     # (1, nz) f32

    x = x_ref[...].astype(jnp.bfloat16)                      # (B, in_dim)

    h1 = jnp.dot(x, w1, preferred_element_type=jnp.float32)  # (B, nz) f32
    h1 = jnp.maximum(h1 + b1, 0.0)

    h2 = jnp.dot(h1.astype(jnp.bfloat16), w2,
                 preferred_element_type=jnp.float32)         # (B, nz) f32
    h2 = jnp.maximum(h2 + b2, 0.0)

    # mean_B(h2 @ w3 + b3) == (mean_B h2) @ w3 + b3   (mean is linear).
    # Column mean: XLU sublane reduce.  Projection: VPU mul + lane reduce.
    # b3_row is [b3, 0, ..., 0] so adding it before the lane sum contributes
    # exactly b3.  No MXU work for the last layer.
    col_mean = jnp.mean(h2, axis=0, keepdims=True)           # (1, nz)
    o_ref[0] = jnp.sum(col_mean * w3_row + b3_row)           # scalar -> SMEM


def pack_params(w1, b1, w2, b2, w3, b3):
    """Pack all MLP_D parameters into one (padded_rows, nz) f32 tile.

    Done ONCE at parameter init/update time -- not in the per-call path.
    """
    in_dim, nz = w1.shape
    b3 = jnp.asarray(b3, jnp.float32).reshape(1, 1)          # defensive reshape
    w3_row = jnp.asarray(w3, jnp.float32).reshape(1, nz)
    b3_row = jnp.zeros((1, nz), jnp.float32).at[0, 0].set(b3[0, 0])

    rows = in_dim + nz + 4
    padded_rows = ((rows + 7) // 8) * 8                      # sublane multiple
    pad = jnp.zeros((padded_rows - rows, nz), jnp.float32)

    return jnp.concatenate(
        [
            jnp.asarray(w1, jnp.float32),
            jnp.asarray(w2, jnp.float32),
            jnp.asarray(b1, jnp.float32).reshape(1, nz),
            jnp.asarray(b2, jnp.float32).reshape(1, nz),
            w3_row,
            b3_row,
            pad,
        ],
        axis=0,
    )


@jax.jit
def mlp_d_forward(x, params):
    vmem = pltpu.MemorySpace.VMEM
    out = pl.pallas_call(
        mlp_d_kernel,
        out_shape=jax.ShapeDtypeStruct((1,), jnp.float32),
        in_specs=[
            pl.BlockSpec(memory_space=vmem),   # x       (B, in_dim)
            pl.BlockSpec(memory_space=vmem),   # params  (padded_rows, nz)
        ],
        out_specs=pl.BlockSpec(memory_space=pltpu.MemorySpace.SMEM),
    )(x, params)
    return out                                               # shape (1,)


def reference_forward(x, w1, b1, w2, b2, w3, b3):
    h1 = jnp.maximum(x @ w1 + b1, 0.0)
    h2 = jnp.maximum(h1 @ w2 + b2, 0.0)
    y = h2 @ w3 + b3
    return jnp.mean(y, axis=0).reshape(1)


if __name__ == "__main__":
    # Module hyperparams (small, consistent with MLP_D(isize, nz, nc, ndf, ngpu)):
    nz = 32
    nc = 4
    batch = 8
    in_dim = nc * nz  # Linear(nc*nz, nz)

    key = jax.random.PRNGKey(0)
    kx, k1, k2, k3, k4, k5, k6 = jax.random.split(key, 7)

    x = jax.random.normal(kx, (batch, in_dim), dtype=jnp.float32)

    # Deterministic parameter init (weights stored as (in, out)).
    w1 = jax.random.normal(k1, (in_dim, nz), dtype=jnp.float32) * 0.05
    b1 = jax.random.normal(k2, (1, nz), dtype=jnp.float32) * 0.05
    w2 = jax.random.normal(k3, (nz, nz), dtype=jnp.float32) * 0.05
    b2 = jax.random.normal(k4, (1, nz), dtype=jnp.float32) * 0.05
    w3 = jax.random.normal(k5, (nz, 1), dtype=jnp.float32) * 0.05
    b3 = jax.random.normal(k6, (1, 1), dtype=jnp.float32) * 0.05

    # Packing happens once, outside the per-call hot path.
    params = jax.block_until_ready(pack_params(w1, b1, w2, b2, w3, b3))

    out = mlp_d_forward(x, params)
    out = jax.block_until_ready(out)

    ref = reference_forward(x, w1, b1, w2, b2, w3, b3)
    assert out.shape == (1,), out.shape
    # bf16 MXU inputs -> tolerance loosened vs pure-f32 reference.
    assert jnp.allclose(out, ref, atol=1e-2, rtol=1e-2), (out, ref)

    print("KERNEL_OK")
</pallas_src>

<mosaic_0001>
module attributes {stable_mosaic.version = 11 : i64} {
  func.func @mlp_d_kernel(%arg0: memref<8x128xf32, #tpu.memory_space<vmem>>, %arg1: memref<168x32xf32, #tpu.memory_space<vmem>>, %arg2: memref<1xf32, #tpu.memory_space<smem>>) attributes {dimension_semantics = [], scalar_prefetch = 0 : i64, scratch_operands = 0 : i64, tpu.core_type = #tpu.core_type<tc>} {
    %c0 = arith.constant 0 : index
    %c0_0 = arith.constant 0 : index
    %0 = vector.load %arg1[%c0, %c0_0] : memref<168x32xf32, #tpu.memory_space<vmem>>, vector<128x32xf32>
    %1 = arith.truncf %0 : vector<128x32xf32> to vector<128x32xbf16>
    %c128 = arith.constant 128 : index
    %c0_1 = arith.constant 0 : index
    %2 = vector.load %arg1[%c128, %c0_1] : memref<168x32xf32, #tpu.memory_space<vmem>>, vector<32x32xf32>
    %3 = arith.truncf %2 : vector<32x32xf32> to vector<32x32xbf16>
    %c160 = arith.constant 160 : index
    %c0_2 = arith.constant 0 : index
    %4 = vector.load %arg1[%c160, %c0_2] : memref<168x32xf32, #tpu.memory_space<vmem>>, vector<1x32xf32>
    %c161 = arith.constant 161 : index
    %c0_3 = arith.constant 0 : index
    %5 = vector.load %arg1[%c161, %c0_3] : memref<168x32xf32, #tpu.memory_space<vmem>>, vector<1x32xf32>
    %c162 = arith.constant 162 : index
    %c0_4 = arith.constant 0 : index
    %6 = vector.load %arg1[%c162, %c0_4] : memref<168x32xf32, #tpu.memory_space<vmem>>, vector<1x32xf32>
    %c163 = arith.constant 163 : index
    %c0_5 = arith.constant 0 : index
    %7 = vector.load %arg1[%c163, %c0_5] : memref<168x32xf32, #tpu.memory_space<vmem>>, vector<1x32xf32>
    %c0_6 = arith.constant 0 : index
    %c0_7 = arith.constant 0 : index
    %8 = vector.load %arg0[%c0_6, %c0_7] : memref<8x128xf32, #tpu.memory_space<vmem>>, vector<8x128xf32>
    %9 = arith.truncf %8 : vector<8x128xf32> to vector<8x128xbf16>
    %cst = arith.constant dense<0.000000e+00> : vector<8x32xf32>
    %10 = tpu.matmul %9, %1, %cst {dimension_numbers = #tpu.dot_dimension_numbers<[1], [0], [0], [1], [0, 0, 1, 1], [], []>} : vector<8x128xbf16>, vector<128x32xbf16>, vector<8x32xf32> -> vector<8x32xf32>
    %11 = vector.broadcast %4 : vector<1x32xf32> to vector<8x32xf32>
    %12 = arith.addf %10, %11 : vector<8x32xf32>
    %cst_8 = arith.constant 0.000000e+00 : f32
    %13 = vector.broadcast %cst_8 : f32 to vector<8x32xf32>
    %14 = arith.maximumf %12, %13 : vector<8x32xf32>
    %15 = arith.truncf %14 : vector<8x32xf32> to vector<8x32xbf16>
    %cst_9 = arith.constant dense<0.000000e+00> : vector<8x32xf32>
    %16 = tpu.matmul %15, %3, %cst_9 {dimension_numbers = #tpu.dot_dimension_numbers<[1], [0], [0], [1], [0, 0, 1, 1], [], []>} : vector<8x32xbf16>, vector<32x32xbf16>, vector<8x32xf32> -> vector<8x32xf32>
    %17 = vector.broadcast %5 : vector<1x32xf32> to vector<8x32xf32>
    %18 = arith.addf %16, %17 : vector<8x32xf32>
    %cst_10 = arith.constant 0.000000e+00 : f32
    %19 = vector.broadcast %cst_10 : f32 to vector<8x32xf32>
    %20 = arith.maximumf %18, %19 : vector<8x32xf32>
    %cst_11 = arith.constant dense<0.000000e+00> : vector<32xf32>
    %21 = vector.multi_reduction <add>, %20, %cst_11 [0] : vector<8x32xf32> to vector<32xf32>
    %22 = vector.shape_cast %21 : vector<32xf32> to vector<1x32xf32>
    %cst_12 = arith.constant 8.000000e+00 : f32
    %23 = vector.broadcast %cst_12 : f32 to vector<1x32xf32>
    %24 = arith.divf %22, %23 : vector<1x32xf32>
    %25 = arith.mulf %24, %6 : vector<1x32xf32>
    %26 = arith.addf %25, %7 : vector<1x32xf32>
    %27 = vector.shape_cast %26 : vector<1x32xf32> to vector<1x1x32xf32>
    %cst_13 = arith.constant dense<0.000000e+00> : vector<1xf32>
    %28 = vector.multi_reduction <add>, %27, %cst_13 [1, 2] : vector<1x1x32xf32> to vector<1xf32>
    %29 = vector.shape_cast %28 : vector<1xf32> to vector<1x1x1xf32>
    %30 = vector.extract %29[0, 0, 0] : f32 from vector<1x1x1xf32>
    %c0_14 = arith.constant 0 : index
    %31 = memref.load %arg2[%c0_14] : memref<1xf32, #tpu.memory_space<smem>>
    memref.store %30, %arg2[%c0_14] : memref<1xf32, #tpu.memory_space<smem>>
    return
  }
}

</mosaic_0001>

<bundles_post_ra>
// kernel: mlp_d_forward.1
= control target key start
LH: loop header
LB: loop body
LE: loop exit
PB: predicated region body
PF: predicated region fallthrough
CT: control target
= control target key end

     0   :  { %s247_s0 = inlined_call_operand.vmem [shape: f32[8,128], index: 0, kind: input, shape index: {}]   ;;  %s248_s1 = inlined_call_operand.vmem [shape: f32[168,32], index: 1, kind: input, shape index: {}]   ;;  %s249_s2 = inlined_call_operand.hbm [shape: f32[1], index: 2, kind: output, shape index: {}]  }
   0x1   :  { %v27_v0 = vld [vmem:[%s248_s1 + $0x70] sm:$0xff]  ;;  %v28_v1 = vld [vmem:[%s248_s1 + $0x78] sm:$0xff]  ;;  %v25_v2 = vld [vmem:[%s248_s1 + $0x60] sm:$0xff] }
   0x2   :  { %v36_v3 = vpack.c.bf16 %v28_v1, %v27_v0  ;;  %v26_v4 = vld [vmem:[%s248_s1 + $0x68] sm:$0xff]  ;;  %v23_v6 = vld [vmem:[%s248_s1 + $0x50] sm:$0xff]  ;;  %v24_v7 = vld [vmem:[%s248_s1 + $0x58] sm:$0xff] }
   0x3   :  { %v35_v5 = vpack.c.bf16 %v26_v4, %v25_v2 }
   0x4   :  { %50 = vmatpush.bf16.msra.mxu0 %v36_v3 }
   0x5   :  { %7 = vsyncpa [#allocation3], 0  ;;  %v34_v8 = vpack.c.bf16 %v24_v7, %v23_v6  ;;  %v21_v9 = vld [vmem:[%s248_s1 + $0x40] sm:$0xff]  ;;  %v22_v10 = vld [vmem:[%s248_s1 + $0x48] sm:$0xff]  ;;  %vm66_vm0 = vcmask 261120   ;;  %v152_v38 = vmov 8.0  }
   0x6   :  { %v33_v11 = vpack.c.bf16 %v22_v10, %v21_v9  ;;  %v19_v12 = vld [vmem:[%s248_s1 + $0x30] sm:$0xff]  ;;  %v20_v13 = vld [vmem:[%s248_s1 + $0x38] sm:$0xff]  ;;  %v17_v15 = vld [vmem:[%s248_s1 + $0x20] sm:$0xff]  ;;  %136 = vrcp.f32 %v152_v38  ;;  %vm101_vm2 = vcmask 253952   ;;  %s119_s4 = sshll.u32 %s249_s2, 4  ;;  %s120_s4 = int_to_ptr.hbm [resolvable:$true] %s119_s4 }
   0x7   :  { %v32_v14 = vpack.c.bf16 %v20_v13, %v19_v12  ;;  %v18_v16 = vld [vmem:[%s248_s1 + $0x28] sm:$0xff]  ;;  %v15_v18 = vld [vmem:[%s248_s1 + $0x10] sm:$0xff]  ;;  %v16_v19 = vld [vmem:[%s248_s1 + $0x18] sm:$0xff] }
   0x8   :  { %51 = vmatpush.bf16.msra.mxu0 %v35_v5  ;;  %v31_v17 = vpack.c.bf16 %v18_v16, %v17_v15  ;;  %v30_v20 = vpack.c.bf16 %v16_v19, %v15_v18  ;;  %v13_v21 = vld [vmem:[%s248_s1] sm:$0xff]  ;;  %v14_v22 = vld [vmem:[%s248_s1 + $0x8] sm:$0xff]  ;;  %v39_v26 = vld [vmem:[%s248_s1 + $0x90] sm:$0xff] }
   0x9   :  { %v29_v23 = vpack.c.bf16 %v14_v22, %v13_v21  ;;  %v47_v24 = vld [vmem:[%s247_s0] sm:$0xff]  ;;  %v40_v27 = vld [vmem:[%s248_s1 + $0x98] sm:$0xff]  ;;  %v38_v30 = vld [vmem:[%s248_s1 + $0x88] sm:$0xff] }
   0xa   :  { %v48_v25 = vpack.c.bf16 %v47_v24, %v47_v24  ;;  %v42_v28 = vpack.c.bf16 %v40_v27, %v39_v26  ;;  %v37_v29 = vld [vmem:[%s248_s1 + $0x80] sm:$0xff] }
   0xb   :  { %v41_v31 = vpack.c.bf16 %v38_v30, %v37_v29  ;;  %v134_v32 = vld [vmem:[%s248_s1 + $0xa0] ss:$0 sm:$0xff]  ;;  %v135_v40 = vld [vmem:[%s248_s1 + $0xa1] ss:$0 sm:$0xff]  ;;  %v45_v57 = vld [vmem:[%s248_s1 + $0xa2] sm:$0x1] }
   0xc   :  { %52 = vmatpush.bf16.msra.mxu0 %v34_v8  ;;  %76 = vmatpush.bf16.msra.mxu1 %v42_v28  ;;  %v137_v39 = vpop.eup %136  ;;  %v46_v59 = vld [vmem:[%s248_s1 + $0xa3] sm:$0x1]  ;;  %s153_s1 = smov [#allocation2]  }
   0xd   :  { %v92_v41 = vmul.f32 8.0, %v137_v39  ;;  %vm96_vm1 = vweird.f32 %v137_v39 }
   0xf   :  { %v93_v45 = vsub.f32 1.0, %v92_v41 }
  0x10   :  { %53 = vmatpush.bf16.msra.mxu0 %v33_v11  ;;  %77 = vmatpush.bf16.msra.mxu1 %v41_v31 }
  0x11   :  { %v94_v48 = vmul.f32 %v137_v39, %v93_v45 }
  0x13   :  { %v95_v52 = vadd.f32 %v137_v39, %v94_v48 }
  0x14   :  { %54 = vmatpush.bf16.msra.mxu0 %v32_v14 }
  0x15   :  { %v97_v55 = vsel %vm96_vm1, %v137_v39, %v95_v52 }
  0x18   :  { %55 = vmatpush.bf16.msra.mxu0 %v31_v17 }
  0x1c   :  { %56 = vmatpush.bf16.msra.mxu0 %v30_v20 }
  0x20   :  { %57 = vmatpush.bf16.msra.mxu0 %v29_v23 }
  0x23   :  { %58 = vmatmul.bf16.vlgmr.msra.gmra.mxu0 %v48_v25 }
  0xa0   :  { %v59_v33 = vpop.f32.mrf.mxu0 }
  0xa1   :  { %v60_v34 = vadd.f32 %v134_v32, %v59_v33 }
  0xa3   :  { %v63_v35 = vmax.f32 %v60_v34, 0.0 }
  0xa5   :  { %v64_v36 = vpack.c.bf16 %v63_v35, %v63_v35 }
  0xa7   :  { %129 = vmatmul.msk.bf16.vlgmr.msra.gmra.mxu1 %vm66_vm0, %v64_v36 }
  0xa8   :  { %v61_v37 = vpop.f32.mrf.mxu0 }
 0x124   :  { %v79_v42 = vpop.f32.mrf.mxu1 }
 0x125   :  { %v80_v43 = vadd.f32 %v135_v40, %v79_v42 }
 0x127   :  { %v83_v44 = vmax.f32 %v80_v43, 0.0 }
 0x129   :  { %v84_v46 = vsel %vm66_vm0, %v83_v44, 0.0 }
 0x12a   :  { %v85_v47 = vrot.slane %v84_v46, 4 }
 0x12c   :  { %v86_v49 = vadd.f32 %v85_v47, %v84_v46  ;;  %v81_v50 = vpop.f32.mrf.mxu1 }
 0x12e   :  { %v87_v51 = vrot.slane %v86_v49, 2 }
 0x130   :  { %v88_v53 = vadd.f32 %v87_v51, %v86_v49 }
 0x132   :  { %v89_v54 = vrot.slane %v88_v53, 1 }
 0x134   :  { %v90_v56 = vadd.f32 %v89_v54, %v88_v53 }
 0x136   :  { %v98_v58 = vmul.f32 %v97_v55, %v90_v56 }
 0x138   :  { %v99_v60 = vmul.f32 %v98_v58, %v45_v57 }
 0x13a   :  { %v100_v61 = vadd.f32 %v99_v60, %v46_v59 }
 0x13c   :  { %v102_v62 = vsel %vm101_vm2, %v100_v61, 0.0 }
 0x13d   :  { %103 = vadd.xlane.f32.xlu0 %v102_v62 }
 0x1b0   :  { %v104_v63 = vpop.xlane.xlu0 %103 }
 0x1b1   :  { %v105_v0 = vrot.slane %v104_v63, 4 }
 0x1b3   :  { %v106_v1 = vadd.f32 %v105_v0, %v104_v63 }
 0x1b5   :  { %v107_v2 = vrot.slane %v106_v1, 2 }
 0x1b7   :  { %v108_v3 = vadd.f32 %v107_v2, %v106_v1 }
 0x1b9   :  { %v109_v4 = vrot.slane %v108_v3, 1 }
 0x1bb   :  { %v110_v5 = vadd.f32 %v109_v4, %v108_v3 }
 0x1bd   :  { %130 = vpush %v110_v5 }
 0x1ee   :  { %s131_s5 = spop %130 }
 0x1ef   :  { %113 = sst [smem:[#allocation2]] %s131_s5 }
 0x1f0   :  { %122 = dma.smem_to_hbm %s153_s1, 16, %s120_s4, [#allocation3]  }
 0x1f1   :  { %150 = dma.done.wait [#allocation3], 16  }
 0x1f2   :  { %151 = vsyncadd [#allocation3], 4294967280 }
 0x1f3   :  { %127 = sfence }
 0x1f4   :  { %128 = vsyncpa [#allocation3], 1 }

</bundles_post_ra>
